<compile_context>
chip_gen: v5e
topology: v5e:2x2
jax: 0.10.0
libtpu: 0.0.40
codegen_flags: <defaults>
</compile_context>

<pallas_src>
import functools
import math

import jax
import jax.numpy as jnp
from jax.experimental import pallas as pl
from jax.experimental.pallas import tpu as pltpu


def _round_up(x: int, m: int) -> int:
    return ((x + m - 1) // m) * m


def _interp_matrix(in_size: int, out_size: int, out_pad: int,
                   dtype=jnp.float32) -> jnp.ndarray:
    """Dense (out_pad, in_size) bilinear interpolation matrix.

    Rows [0, out_size) match torch F.interpolate(mode='bilinear',
    align_corners=False, antialias=False): src = (i + 0.5) * in/out - 0.5,
    clamped at 0.  Rows [out_size, out_pad) are zero (layout padding only).
    """
    scale = in_size / out_size
    i = jnp.arange(out_pad, dtype=jnp.float32)
    src = jnp.maximum((i + 0.5) * scale - 0.5, 0.0)
    i0f = jnp.floor(src)
    frac = src - i0f
    i0 = jnp.minimum(i0f.astype(jnp.int32), in_size - 1)
    i1 = jnp.minimum(i0 + 1, in_size - 1)
    valid = i < out_size
    rows = jnp.arange(out_pad)
    m = jnp.zeros((out_pad, in_size), dtype)
    m = m.at[rows, i0].add(jnp.where(valid, 1.0 - frac, 0.0).astype(dtype))
    m = m.at[rows, i1].add(jnp.where(valid, frac, 0.0).astype(dtype))
    return m


def _resize_kernel(wh_ref, x_ref, wwt_ref, o_ref, *, tb: int, h_first: bool):
    # wh_ref : (P_pad, H)        f32, grid-constant (resident across steps)
    # x_ref  : (TB, H, W)        native input dtype
    # wwt_ref: (W, Q_pad)        f32, grid-constant
    # o_ref  : (TB, P_pad, Q_pad)
    wh = wh_ref[...]
    wwt = wwt_ref[...]
    # TODO(synk): reformulate as two flat (TB*rows) GEMMs with an in-kernel
    # transpose of the intermediate for maximal MXU feeding; and for v5e with
    # very large downscale ratios, a 2-tap gather + VPU lerp would avoid the
    # mostly-zero dense matrices.
    for i in range(tb):
        xi = x_ref[i]  # (H, W)
        if h_first:
            t = jnp.dot(wh, xi, preferred_element_type=jnp.float32)    # (P_pad, W)
            out = jnp.dot(t, wwt, preferred_element_type=jnp.float32)  # (P_pad, Q_pad)
        else:
            t = jnp.dot(xi, wwt, preferred_element_type=jnp.float32)   # (H, Q_pad)
            out = jnp.dot(wh, t, preferred_element_type=jnp.float32)   # (P_pad, Q_pad)
        o_ref[i] = out.astype(o_ref.dtype)


def _choose_batch_tile(b, h, w, p_pad, q_pad, in_bytes, out_bytes):
    """Images per grid step, sized against a ~32 MiB VMEM tile budget."""
    budget = 32 * 1024 * 1024
    weights = 4 * (p_pad * h + w * q_pad)                 # single-buffered f32
    per_img = (2 * h * w * in_bytes                       # double-buffered input
               + 2 * p_pad * q_pad * out_bytes            # double-buffered output
               + 4 * max(p_pad * w, h * q_pad))           # f32 intermediate
    tb = max(1, (budget - weights) // max(per_img, 1))
    tb = int(min(tb, 32, b))
    if b >= 2:
        tb = min(tb, -(-b // 2))   # keep >= 2 grid steps (v7x has 2 TCs)
    return max(1, tb)


def _pallas_resize(wh, x_flat, wwt, out_dtype, tb, h_first,
                   single_buffered_weights):
    b_pad, h, w = x_flat.shape
    p_pad = wh.shape[0]
    q_pad = wwt.shape[1]
    nb = b_pad // tb

    def const_spec(shape):
        # Grid-constant operand: index_map always (0, 0); single-buffer it to
        # save VMEM when the jax build supports Buffered(1).
        if single_buffered_weights:
            return pl.BlockSpec(shape, lambda i: (0,) * len(shape),
                                pipeline_mode=pl.Buffered(buffer_count=1))
        return pl.BlockSpec(shape, lambda i: (0,) * len(shape))

    kernel = functools.partial(_resize_kernel, tb=tb, h_first=h_first)
    return pl.pallas_call(
        kernel,
        out_shape=jax.ShapeDtypeStruct((b_pad, p_pad, q_pad), out_dtype),
        grid_spec=pltpu.PrefetchScalarGridSpec(
            num_scalar_prefetch=0,
            grid=(nb,),
            in_specs=[
                const_spec((p_pad, h)),
                pl.BlockSpec((tb, h, w), lambda i: (i, 0, 0)),
                const_spec((w, q_pad)),
            ],
            out_specs=pl.BlockSpec((tb, p_pad, q_pad), lambda i: (i, 0, 0)),
        ),
        compiler_params=pltpu.CompilerParams(
            dimension_semantics=("parallel",),
            vmem_limit_bytes=48 * 1024 * 1024,
        ),
    )(wh, x_flat, wwt)


def short_side_scale(x: jnp.ndarray, size: int) -> jnp.ndarray:
    """Pallas implementation of ShortSideScale.forward (bilinear)."""
    if x.ndim != 4:
        return x
    c, t, h, w = x.shape
    if w < h:
        new_h = int(math.floor(h / w * size))
        new_w = size
    else:
        new_h = size
        new_w = int(math.floor(w / h * size))

    # Lane/sublane padded output dims (padding sliced off below).
    p_pad = _round_up(new_h, 8)
    q_pad = _round_up(new_w, 128)

    # f32 interpolation weights (kept f32 for fraction precision; the input
    # stays in its native dtype and is promoted in-kernel with f32 accum).
    wh = _interp_matrix(h, new_h, p_pad)          # (P_pad, H)
    wwt = _interp_matrix(w, new_w, q_pad).T       # (W, Q_pad)

    # TODO(synk): torch defines no integer bilinear; non-float inputs are
    # returned as float32 here rather than truncating back to ints.
    out_dtype = x.dtype if jnp.issubdtype(x.dtype, jnp.floating) else jnp.float32

    b = c * t
    in_bytes = jnp.dtype(x.dtype).itemsize
    out_bytes = jnp.dtype(out_dtype).itemsize
    tb = _choose_batch_tile(b, h, w, p_pad, q_pad, in_bytes, out_bytes)
    nb = -(-b // tb)
    b_pad = nb * tb

    x_flat = x.reshape(b, h, w)                   # native dtype, no f32 cast
    if b_pad != b:
        x_flat = jnp.pad(x_flat, ((0, b_pad - b), (0, 0), (0, 0)))

    # Pick the cheaper matmul order (MACs on the padded shapes actually run).
    cost_h_first = p_pad * h * w + p_pad * w * q_pad
    cost_w_first = h * w * q_pad + p_pad * h * q_pad
    h_first = cost_h_first <= cost_w_first

    try:
        out = _pallas_resize(wh, x_flat, wwt, out_dtype, tb, h_first, True)
    except Exception:
        # Fallback for jax builds that reject single-buffered (Buffered(1))
        # operands in the pallas_call pipeline.
        out = _pallas_resize(wh, x_flat, wwt, out_dtype, tb, h_first, False)

    out = out[:b, :new_h, :new_w]
    return out.reshape(c, t, new_h, new_w)


def _reference(x: jnp.ndarray, size: int) -> jnp.ndarray:
    """Plain-JAX reference (same separable-matmul math, no Pallas)."""
    c, t, h, w = x.shape
    if w < h:
        new_h, new_w = int(math.floor(h / w * size)), size
    else:
        new_h, new_w = size, int(math.floor(w / h * size))
    wh = _interp_matrix(h, new_h, new_h)
    ww = _interp_matrix(w, new_w, new_w)
    xf = x.reshape(c * t, h, w).astype(jnp.float32)
    out = jnp.einsum('ph,bhw,qw->bpq', wh, xf, ww)
    return out.reshape(c, t, new_h, new_w).astype(x.dtype)


if __name__ == "__main__":
    key = jax.random.PRNGKey(0)
    # (C, T, H, W); W > H so the short side (H) is scaled to `size`.
    C, T, H, W = 3, 4, 16, 24
    size = 8
    x = jax.random.normal(key, (C, T, H, W), dtype=jnp.float32)

    out = short_side_scale(x, size)
    out = jax.block_until_ready(out)

    ref = _reference(x, size)
    assert out.shape == (C, T, 8, 12), out.shape
    err = float(jnp.max(jnp.abs(out - ref)))
    assert err < 1e-5, err

    print("KERNEL_OK")
</pallas_src>

<mosaic_0001>
module attributes {stable_mosaic.version = 11 : i64} {
  func.func @_resize_kernel(%arg0: i32, %arg1: memref<8x16xf32, #tpu.memory_space<vmem>>, %arg2: memref<6x16x24xf32, #tpu.memory_space<vmem>>, %arg3: memref<24x128xf32, #tpu.memory_space<vmem>>, %arg4: memref<6x8x128xf32, #tpu.memory_space<vmem>>) attributes {dimension_semantics = [#tpu.dimension_semantics<parallel>], iteration_bounds = array<i64: 2>, scalar_prefetch = 0 : i64, scratch_operands = 0 : i64, tpu.core_type = #tpu.core_type<tc>, window_params = [{pipeline_mode = #tpu.pipeline_mode<synchronous>, transform_indices = @transform_0, window_bounds = array<i64: 8, 16>}, {transform_indices = @transform_1, window_bounds = array<i64: 6, 16, 24>}, {pipeline_mode = #tpu.pipeline_mode<synchronous>, transform_indices = @transform_2, window_bounds = array<i64: 24, 128>}, {transform_indices = @transform_3, window_bounds = array<i64: 6, 8, 128>}]} {
    %c0 = arith.constant 0 : index
    %c0_0 = arith.constant 0 : index
    %0 = vector.load %arg1[%c0, %c0_0] : memref<8x16xf32, #tpu.memory_space<vmem>>, vector<8x16xf32>
    %c0_1 = arith.constant 0 : index
    %c0_2 = arith.constant 0 : index
    %1 = vector.load %arg3[%c0_1, %c0_2] : memref<24x128xf32, #tpu.memory_space<vmem>>, vector<24x128xf32>
    %c0_3 = arith.constant 0 : index
    %c0_4 = arith.constant 0 : index
    %c0_5 = arith.constant 0 : index
    %2 = vector.load %arg2[%c0_3, %c0_4, %c0_5] : memref<6x16x24xf32, #tpu.memory_space<vmem>>, vector<1x16x24xf32>
    %3 = vector.shape_cast %2 : vector<1x16x24xf32> to vector<16x24xf32>
    %cst = arith.constant dense<0.000000e+00> : vector<8x24xf32>
    %4 = tpu.matmul %0, %3, %cst {dimension_numbers = #tpu.dot_dimension_numbers<[1], [0], [0], [1], [0, 0, 1, 1], [], []>} : vector<8x16xf32>, vector<16x24xf32>, vector<8x24xf32> -> vector<8x24xf32>
    %cst_6 = arith.constant dense<0.000000e+00> : vector<8x128xf32>
    %5 = tpu.matmul %4, %1, %cst_6 {dimension_numbers = #tpu.dot_dimension_numbers<[1], [0], [0], [1], [0, 0, 1, 1], [], []>} : vector<8x24xf32>, vector<24x128xf32>, vector<8x128xf32> -> vector<8x128xf32>
    %c0_7 = arith.constant 0 : index
    %c0_8 = arith.constant 0 : index
    %c0_9 = arith.constant 0 : index
    %6 = vector.load %arg4[%c0_7, %c0_8, %c0_9] : memref<6x8x128xf32, #tpu.memory_space<vmem>>, vector<1x8x128xf32>
    %7 = vector.shape_cast %6 : vector<1x8x128xf32> to vector<8x128xf32>
    %8 = vector.shape_cast %5 : vector<8x128xf32> to vector<1x8x128xf32>
    tpu.vector_store %arg4[%c0_7, %c0_8, %c0_9], %8 {strides = array<i32>} : memref<6x8x128xf32, #tpu.memory_space<vmem>>, vector<1x8x128xf32>,
    %c1 = arith.constant 1 : index
    %c0_10 = arith.constant 0 : index
    %c0_11 = arith.constant 0 : index
    %9 = vector.load %arg2[%c1, %c0_10, %c0_11] : memref<6x16x24xf32, #tpu.memory_space<vmem>>, vector<1x16x24xf32>
    %10 = vector.shape_cast %9 : vector<1x16x24xf32> to vector<16x24xf32>
    %cst_12 = arith.constant dense<0.000000e+00> : vector<8x24xf32>
    %11 = tpu.matmul %0, %10, %cst_12 {dimension_numbers = #tpu.dot_dimension_numbers<[1], [0], [0], [1], [0, 0, 1, 1], [], []>} : vector<8x16xf32>, vector<16x24xf32>, vector<8x24xf32> -> vector<8x24xf32>
    %cst_13 = arith.constant dense<0.000000e+00> : vector<8x128xf32>
    %12 = tpu.matmul %11, %1, %cst_13 {dimension_numbers = #tpu.dot_dimension_numbers<[1], [0], [0], [1], [0, 0, 1, 1], [], []>} : vector<8x24xf32>, vector<24x128xf32>, vector<8x128xf32> -> vector<8x128xf32>
    %c1_14 = arith.constant 1 : index
    %c0_15 = arith.constant 0 : index
    %c0_16 = arith.constant 0 : index
    %13 = vector.load %arg4[%c1_14, %c0_15, %c0_16] : memref<6x8x128xf32, #tpu.memory_space<vmem>>, vector<1x8x128xf32>
    %14 = vector.shape_cast %13 : vector<1x8x128xf32> to vector<8x128xf32>
    %15 = vector.shape_cast %12 : vector<8x128xf32> to vector<1x8x128xf32>
    tpu.vector_store %arg4[%c1_14, %c0_15, %c0_16], %15 {strides = array<i32>} : memref<6x8x128xf32, #tpu.memory_space<vmem>>, vector<1x8x128xf32>,
    %c2 = arith.constant 2 : index
    %c0_17 = arith.constant 0 : index
    %c0_18 = arith.constant 0 : index
    %16 = vector.load %arg2[%c2, %c0_17, %c0_18] : memref<6x16x24xf32, #tpu.memory_space<vmem>>, vector<1x16x24xf32>
    %17 = vector.shape_cast %16 : vector<1x16x24xf32> to vector<16x24xf32>
    %cst_19 = arith.constant dense<0.000000e+00> : vector<8x24xf32>
    %18 = tpu.matmul %0, %17, %cst_19 {dimension_numbers = #tpu.dot_dimension_numbers<[1], [0], [0], [1], [0, 0, 1, 1], [], []>} : vector<8x16xf32>, vector<16x24xf32>, vector<8x24xf32> -> vector<8x24xf32>
    %cst_20 = arith.constant dense<0.000000e+00> : vector<8x128xf32>
    %19 = tpu.matmul %18, %1, %cst_20 {dimension_numbers = #tpu.dot_dimension_numbers<[1], [0], [0], [1], [0, 0, 1, 1], [], []>} : vector<8x24xf32>, vector<24x128xf32>, vector<8x128xf32> -> vector<8x128xf32>
    %c2_21 = arith.constant 2 : index
    %c0_22 = arith.constant 0 : index
    %c0_23 = arith.constant 0 : index
    %20 = vector.load %arg4[%c2_21, %c0_22, %c0_23] : memref<6x8x128xf32, #tpu.memory_space<vmem>>, vector<1x8x128xf32>
    %21 = vector.shape_cast %20 : vector<1x8x128xf32> to vector<8x128xf32>
    %22 = vector.shape_cast %19 : vector<8x128xf32> to vector<1x8x128xf32>
    tpu.vector_store %arg4[%c2_21, %c0_22, %c0_23], %22 {strides = array<i32>} : memref<6x8x128xf32, #tpu.memory_space<vmem>>, vector<1x8x128xf32>,
    %c3 = arith.constant 3 : index
    %c0_24 = arith.constant 0 : index
    %c0_25 = arith.constant 0 : index
    %23 = vector.load %arg2[%c3, %c0_24, %c0_25] : memref<6x16x24xf32, #tpu.memory_space<vmem>>, vector<1x16x24xf32>
    %24 = vector.shape_cast %23 : vector<1x16x24xf32> to vector<16x24xf32>
    %cst_26 = arith.constant dense<0.000000e+00> : vector<8x24xf32>
    %25 = tpu.matmul %0, %24, %cst_26 {dimension_numbers = #tpu.dot_dimension_numbers<[1], [0], [0], [1], [0, 0, 1, 1], [], []>} : vector<8x16xf32>, vector<16x24xf32>, vector<8x24xf32> -> vector<8x24xf32>
    %cst_27 = arith.constant dense<0.000000e+00> : vector<8x128xf32>
    %26 = tpu.matmul %25, %1, %cst_27 {dimension_numbers = #tpu.dot_dimension_numbers<[1], [0], [0], [1], [0, 0, 1, 1], [], []>} : vector<8x24xf32>, vector<24x128xf32>, vector<8x128xf32> -> vector<8x128xf32>
    %c3_28 = arith.constant 3 : index
    %c0_29 = arith.constant 0 : index
    %c0_30 = arith.constant 0 : index
    %27 = vector.load %arg4[%c3_28, %c0_29, %c0_30] : memref<6x8x128xf32, #tpu.memory_space<vmem>>, vector<1x8x128xf32>
    %28 = vector.shape_cast %27 : vector<1x8x128xf32> to vector<8x128xf32>
    %29 = vector.shape_cast %26 : vector<8x128xf32> to vector<1x8x128xf32>
    tpu.vector_store %arg4[%c3_28, %c0_29, %c0_30], %29 {strides = array<i32>} : memref<6x8x128xf32, #tpu.memory_space<vmem>>, vector<1x8x128xf32>,
    %c4 = arith.constant 4 : index
    %c0_31 = arith.constant 0 : index
    %c0_32 = arith.constant 0 : index
    %30 = vector.load %arg2[%c4, %c0_31, %c0_32] : memref<6x16x24xf32, #tpu.memory_space<vmem>>, vector<1x16x24xf32>
    %31 = vector.shape_cast %30 : vector<1x16x24xf32> to vector<16x24xf32>
    %cst_33 = arith.constant dense<0.000000e+00> : vector<8x24xf32>
    %32 = tpu.matmul %0, %31, %cst_33 {dimension_numbers = #tpu.dot_dimension_numbers<[1], [0], [0], [1], [0, 0, 1, 1], [], []>} : vector<8x16xf32>, vector<16x24xf32>, vector<8x24xf32> -> vector<8x24xf32>
    %cst_34 = arith.constant dense<0.000000e+00> : vector<8x128xf32>
    %33 = tpu.matmul %32, %1, %cst_34 {dimension_numbers = #tpu.dot_dimension_numbers<[1], [0], [0], [1], [0, 0, 1, 1], [], []>} : vector<8x24xf32>, vector<24x128xf32>, vector<8x128xf32> -> vector<8x128xf32>
    %c4_35 = arith.constant 4 : index
    %c0_36 = arith.constant 0 : index
    %c0_37 = arith.constant 0 : index
    %34 = vector.load %arg4[%c4_35, %c0_36, %c0_37] : memref<6x8x128xf32, #tpu.memory_space<vmem>>, vector<1x8x128xf32>
    %35 = vector.shape_cast %34 : vector<1x8x128xf32> to vector<8x128xf32>
    %36 = vector.shape_cast %33 : vector<8x128xf32> to vector<1x8x128xf32>
    tpu.vector_store %arg4[%c4_35, %c0_36, %c0_37], %36 {strides = array<i32>} : memref<6x8x128xf32, #tpu.memory_space<vmem>>, vector<1x8x128xf32>,
    %c5 = arith.constant 5 : index
    %c0_38 = arith.constant 0 : index
    %c0_39 = arith.constant 0 : index
    %37 = vector.load %arg2[%c5, %c0_38, %c0_39] : memref<6x16x24xf32, #tpu.memory_space<vmem>>, vector<1x16x24xf32>
    %38 = vector.shape_cast %37 : vector<1x16x24xf32> to vector<16x24xf32>
    %cst_40 = arith.constant dense<0.000000e+00> : vector<8x24xf32>
    %39 = tpu.matmul %0, %38, %cst_40 {dimension_numbers = #tpu.dot_dimension_numbers<[1], [0], [0], [1], [0, 0, 1, 1], [], []>} : vector<8x16xf32>, vector<16x24xf32>, vector<8x24xf32> -> vector<8x24xf32>
    %cst_41 = arith.constant dense<0.000000e+00> : vector<8x128xf32>
    %40 = tpu.matmul %39, %1, %cst_41 {dimension_numbers = #tpu.dot_dimension_numbers<[1], [0], [0], [1], [0, 0, 1, 1], [], []>} : vector<8x24xf32>, vector<24x128xf32>, vector<8x128xf32> -> vector<8x128xf32>
    %c5_42 = arith.constant 5 : index
    %c0_43 = arith.constant 0 : index
    %c0_44 = arith.constant 0 : index
    %41 = vector.load %arg4[%c5_42, %c0_43, %c0_44] : memref<6x8x128xf32, #tpu.memory_space<vmem>>, vector<1x8x128xf32>
    %42 = vector.shape_cast %41 : vector<1x8x128xf32> to vector<8x128xf32>
    %43 = vector.shape_cast %40 : vector<8x128xf32> to vector<1x8x128xf32>
    tpu.vector_store %arg4[%c5_42, %c0_43, %c0_44], %43 {strides = array<i32>} : memref<6x8x128xf32, #tpu.memory_space<vmem>>, vector<1x8x128xf32>,
    return
  }
  func.func @transform_0(%arg0: i32) -> (i32, i32) {
    %c0_i32 = arith.constant 0 : i32
    %c0_i32_0 = arith.constant 0 : i32
    %c0_i32_1 = arith.constant 0 : i32
    return %c0_i32, %c0_i32_0 : i32, i32
  }
  func.func @transform_1(%arg0: i32) -> (i32, i32, i32) {
    %c0_i32 = arith.constant 0 : i32
    %c0_i32_0 = arith.constant 0 : i32
    %c0_i32_1 = arith.constant 0 : i32
    return %arg0, %c0_i32, %c0_i32_0 : i32, i32, i32
  }
  func.func @transform_2(%arg0: i32) -> (i32, i32) {
    %c0_i32 = arith.constant 0 : i32
    %c0_i32_0 = arith.constant 0 : i32
    %c0_i32_1 = arith.constant 0 : i32
    return %c0_i32, %c0_i32_0 : i32, i32
  }
  func.func @transform_3(%arg0: i32) -> (i32, i32, i32) {
    %c0_i32 = arith.constant 0 : i32
    %c0_i32_0 = arith.constant 0 : i32
    %c0_i32_1 = arith.constant 0 : i32
    return %arg0, %c0_i32, %c0_i32_0 : i32, i32, i32
  }
}

module attributes {stable_mosaic.version = 11 : i64} {
  func.func @_resize_kernel(%arg0: i32, %arg1: memref<8x16xf32, #tpu.memory_space<vmem>>, %arg2: memref<6x16x24xf32, #tpu.memory_space<vmem>>, %arg3: memref<24x128xf32, #tpu.memory_space<vmem>>, %arg4: memref<6x8x128xf32, #tpu.memory_space<vmem>>) attributes {dimension_semantics = [#tpu.dimension_semantics<parallel>], iteration_bounds = array<i64: 2>, scalar_prefetch = 0 : i64, scratch_operands = 0 : i64, tpu.core_type = #tpu.core_type<tc>, window_params = [{pipeline_mode = #tpu.pipeline_mode<synchronous>, transform_indices = @transform_0, window_bounds = array<i64: 8, 16>}, {transform_indices = @transform_1, window_bounds = array<i64: 6, 16, 24>}, {pipeline_mode = #tpu.pipeline_mode<synchronous>, transform_indices = @transform_2, window_bounds = array<i64: 24, 128>}, {transform_indices = @transform_3, window_bounds = array<i64: 6, 8, 128>}]} {
    %c0 = arith.constant 0 : index
    %c0_0 = arith.constant 0 : index
    %0 = vector.load %arg1[%c0, %c0_0] : memref<8x16xf32, #tpu.memory_space<vmem>>, vector<8x16xf32>
    %c0_1 = arith.constant 0 : index
    %c0_2 = arith.constant 0 : index
    %1 = vector.load %arg3[%c0_1, %c0_2] : memref<24x128xf32, #tpu.memory_space<vmem>>, vector<24x128xf32>
    %c0_3 = arith.constant 0 : index
    %c0_4 = arith.constant 0 : index
    %c0_5 = arith.constant 0 : index
    %2 = vector.load %arg2[%c0_3, %c0_4, %c0_5] : memref<6x16x24xf32, #tpu.memory_space<vmem>>, vector<1x16x24xf32>
    %3 = vector.shape_cast %2 : vector<1x16x24xf32> to vector<16x24xf32>
    %cst = arith.constant dense<0.000000e+00> : vector<8x24xf32>
    %4 = tpu.matmul %0, %3, %cst {dimension_numbers = #tpu.dot_dimension_numbers<[1], [0], [0], [1], [0, 0, 1, 1], [], []>} : vector<8x16xf32>, vector<16x24xf32>, vector<8x24xf32> -> vector<8x24xf32>
    %cst_6 = arith.constant dense<0.000000e+00> : vector<8x128xf32>
    %5 = tpu.matmul %4, %1, %cst_6 {dimension_numbers = #tpu.dot_dimension_numbers<[1], [0], [0], [1], [0, 0, 1, 1], [], []>} : vector<8x24xf32>, vector<24x128xf32>, vector<8x128xf32> -> vector<8x128xf32>
    %c0_7 = arith.constant 0 : index
    %c0_8 = arith.constant 0 : index
    %c0_9 = arith.constant 0 : index
    %6 = vector.load %arg4[%c0_7, %c0_8, %c0_9] : memref<6x8x128xf32, #tpu.memory_space<vmem>>, vector<1x8x128xf32>
    %7 = vector.shape_cast %6 : vector<1x8x128xf32> to vector<8x128xf32>
    %8 = vector.shape_cast %5 : vector<8x128xf32> to vector<1x8x128xf32>
    tpu.vector_store %arg4[%c0_7, %c0_8, %c0_9], %8 {strides = array<i32>} : memref<6x8x128xf32, #tpu.memory_space<vmem>>, vector<1x8x128xf32>,
    %c1 = arith.constant 1 : index
    %c0_10 = arith.constant 0 : index
    %c0_11 = arith.constant 0 : index
    %9 = vector.load %arg2[%c1, %c0_10, %c0_11] : memref<6x16x24xf32, #tpu.memory_space<vmem>>, vector<1x16x24xf32>
    %10 = vector.shape_cast %9 : vector<1x16x24xf32> to vector<16x24xf32>
    %cst_12 = arith.constant dense<0.000000e+00> : vector<8x24xf32>
    %11 = tpu.matmul %0, %10, %cst_12 {dimension_numbers = #tpu.dot_dimension_numbers<[1], [0], [0], [1], [0, 0, 1, 1], [], []>} : vector<8x16xf32>, vector<16x24xf32>, vector<8x24xf32> -> vector<8x24xf32>
    %cst_13 = arith.constant dense<0.000000e+00> : vector<8x128xf32>
    %12 = tpu.matmul %11, %1, %cst_13 {dimension_numbers = #tpu.dot_dimension_numbers<[1], [0], [0], [1], [0, 0, 1, 1], [], []>} : vector<8x24xf32>, vector<24x128xf32>, vector<8x128xf32> -> vector<8x128xf32>
    %c1_14 = arith.constant 1 : index
    %c0_15 = arith.constant 0 : index
    %c0_16 = arith.constant 0 : index
    %13 = vector.load %arg4[%c1_14, %c0_15, %c0_16] : memref<6x8x128xf32, #tpu.memory_space<vmem>>, vector<1x8x128xf32>
    %14 = vector.shape_cast %13 : vector<1x8x128xf32> to vector<8x128xf32>
    %15 = vector.shape_cast %12 : vector<8x128xf32> to vector<1x8x128xf32>
    tpu.vector_store %arg4[%c1_14, %c0_15, %c0_16], %15 {strides = array<i32>} : memref<6x8x128xf32, #tpu.memory_space<vmem>>, vector<1x8x128xf32>,
    %c2 = arith.constant 2 : index
    %c0_17 = arith.constant 0 : index
    %c0_18 = arith.constant 0 : index
    %16 = vector.load %arg2[%c2, %c0_17, %c0_18] : memref<6x16x24xf32, #tpu.memory_space<vmem>>, vector<1x16x24xf32>
    %17 = vector.shape_cast %16 : vector<1x16x24xf32> to vector<16x24xf32>
    %cst_19 = arith.constant dense<0.000000e+00> : vector<8x24xf32>
    %18 = tpu.matmul %0, %17, %cst_19 {dimension_numbers = #tpu.dot_dimension_numbers<[1], [0], [0], [1], [0, 0, 1, 1], [], []>} : vector<8x16xf32>, vector<16x24xf32>, vector<8x24xf32> -> vector<8x24xf32>
    %cst_20 = arith.constant dense<0.000000e+00> : vector<8x128xf32>
    %19 = tpu.matmul %18, %1, %cst_20 {dimension_numbers = #tpu.dot_dimension_numbers<[1], [0], [0], [1], [0, 0, 1, 1], [], []>} : vector<8x24xf32>, vector<24x128xf32>, vector<8x128xf32> -> vector<8x128xf32>
    %c2_21 = arith.constant 2 : index
    %c0_22 = arith.constant 0 : index
    %c0_23 = arith.constant 0 : index
    %20 = vector.load %arg4[%c2_21, %c0_22, %c0_23] : memref<6x8x128xf32, #tpu.memory_space<vmem>>, vector<1x8x128xf32>
    %21 = vector.shape_cast %20 : vector<1x8x128xf32> to vector<8x128xf32>
    %22 = vector.shape_cast %19 : vector<8x128xf32> to vector<1x8x128xf32>
    tpu.vector_store %arg4[%c2_21, %c0_22, %c0_23], %22 {strides = array<i32>} : memref<6x8x128xf32, #tpu.memory_space<vmem>>, vector<1x8x128xf32>,
    %c3 = arith.constant 3 : index
    %c0_24 = arith.constant 0 : index
    %c0_25 = arith.constant 0 : index
    %23 = vector.load %arg2[%c3, %c0_24, %c0_25] : memref<6x16x24xf32, #tpu.memory_space<vmem>>, vector<1x16x24xf32>
    %24 = vector.shape_cast %23 : vector<1x16x24xf32> to vector<16x24xf32>
    %cst_26 = arith.constant dense<0.000000e+00> : vector<8x24xf32>
    %25 = tpu.matmul %0, %24, %cst_26 {dimension_numbers = #tpu.dot_dimension_numbers<[1], [0], [0], [1], [0, 0, 1, 1], [], []>} : vector<8x16xf32>, vector<16x24xf32>, vector<8x24xf32> -> vector<8x24xf32>
    %cst_27 = arith.constant dense<0.000000e+00> : vector<8x128xf32>
    %26 = tpu.matmul %25, %1, %cst_27 {dimension_numbers = #tpu.dot_dimension_numbers<[1], [0], [0], [1], [0, 0, 1, 1], [], []>} : vector<8x24xf32>, vector<24x128xf32>, vector<8x128xf32> -> vector<8x128xf32>
    %c3_28 = arith.constant 3 : index
    %c0_29 = arith.constant 0 : index
    %c0_30 = arith.constant 0 : index
    %27 = vector.load %arg4[%c3_28, %c0_29, %c0_30] : memref<6x8x128xf32, #tpu.memory_space<vmem>>, vector<1x8x128xf32>
    %28 = vector.shape_cast %27 : vector<1x8x128xf32> to vector<8x128xf32>
    %29 = vector.shape_cast %26 : vector<8x128xf32> to vector<1x8x128xf32>
    tpu.vector_store %arg4[%c3_28, %c0_29, %c0_30], %29 {strides = array<i32>} : memref<6x8x128xf32, #tpu.memory_space<vmem>>, vector<1x8x128xf32>,
    %c4 = arith.constant 4 : index
    %c0_31 = arith.constant 0 : index
    %c0_32 = arith.constant 0 : index
    %30 = vector.load %arg2[%c4, %c0_31, %c0_32] : memref<6x16x24xf32, #tpu.memory_space<vmem>>, vector<1x16x24xf32>
    %31 = vector.shape_cast %30 : vector<1x16x24xf32> to vector<16x24xf32>
    %cst_33 = arith.constant dense<0.000000e+00> : vector<8x24xf32>
    %32 = tpu.matmul %0, %31, %cst_33 {dimension_numbers = #tpu.dot_dimension_numbers<[1], [0], [0], [1], [0, 0, 1, 1], [], []>} : vector<8x16xf32>, vector<16x24xf32>, vector<8x24xf32> -> vector<8x24xf32>
    %cst_34 = arith.constant dense<0.000000e+00> : vector<8x128xf32>
    %33 = tpu.matmul %32, %1, %cst_34 {dimension_numbers = #tpu.dot_dimension_numbers<[1], [0], [0], [1], [0, 0, 1, 1], [], []>} : vector<8x24xf32>, vector<24x128xf32>, vector<8x128xf32> -> vector<8x128xf32>
    %c4_35 = arith.constant 4 : index
    %c0_36 = arith.constant 0 : index
    %c0_37 = arith.constant 0 : index
    %34 = vector.load %arg4[%c4_35, %c0_36, %c0_37] : memref<6x8x128xf32, #tpu.memory_space<vmem>>, vector<1x8x128xf32>
    %35 = vector.shape_cast %34 : vector<1x8x128xf32> to vector<8x128xf32>
    %36 = vector.shape_cast %33 : vector<8x128xf32> to vector<1x8x128xf32>
    tpu.vector_store %arg4[%c4_35, %c0_36, %c0_37], %36 {strides = array<i32>} : memref<6x8x128xf32, #tpu.memory_space<vmem>>, vector<1x8x128xf32>,
    %c5 = arith.constant 5 : index
    %c0_38 = arith.constant 0 : index
    %c0_39 = arith.constant 0 : index
    %37 = vector.load %arg2[%c5, %c0_38, %c0_39] : memref<6x16x24xf32, #tpu.memory_space<vmem>>, vector<1x16x24xf32>
    %38 = vector.shape_cast %37 : vector<1x16x24xf32> to vector<16x24xf32>
    %cst_40 = arith.constant dense<0.000000e+00> : vector<8x24xf32>
    %39 = tpu.matmul %0, %38, %cst_40 {dimension_numbers = #tpu.dot_dimension_numbers<[1], [0], [0], [1], [0, 0, 1, 1], [], []>} : vector<8x16xf32>, vector<16x24xf32>, vector<8x24xf32> -> vector<8x24xf32>
    %cst_41 = arith.constant dense<0.000000e+00> : vector<8x128xf32>
    %40 = tpu.matmul %39, %1, %cst_41 {dimension_numbers = #tpu.dot_dimension_numbers<[1], [0], [0], [1], [0, 0, 1, 1], [], []>} : vector<8x24xf32>, vector<24x128xf32>, vector<8x128xf32> -> vector<8x128xf32>
    %c5_42 = arith.constant 5 : index
    %c0_43 = arith.constant 0 : index
    %c0_44 = arith.constant 0 : index
    %41 = vector.load %arg4[%c5_42, %c0_43, %c0_44] : memref<6x8x128xf32, #tpu.memory_space<vmem>>, vector<1x8x128xf32>
    %42 = vector.shape_cast %41 : vector<1x8x128xf32> to vector<8x128xf32>
    %43 = vector.shape_cast %40 : vector<8x128xf32> to vector<1x8x128xf32>
    tpu.vector_store %arg4[%c5_42, %c0_43, %c0_44], %43 {strides = array<i32>} : memref<6x8x128xf32, #tpu.memory_space<vmem>>, vector<1x8x128xf32>,
    return
  }
  func.func @transform_0(%arg0: i32) -> (i32, i32) {
    %c0_i32 = arith.constant 0 : i32
    %c0_i32_0 = arith.constant 0 : i32
    %c0_i32_1 = arith.constant 0 : i32
    return %c0_i32, %c0_i32_0 : i32, i32
  }
  func.func @transform_1(%arg0: i32) -> (i32, i32, i32) {
    %c0_i32 = arith.constant 0 : i32
    %c0_i32_0 = arith.constant 0 : i32
    %c0_i32_1 = arith.constant 0 : i32
    return %arg0, %c0_i32, %c0_i32_0 : i32, i32, i32
  }
  func.func @transform_2(%arg0: i32) -> (i32, i32) {
    %c0_i32 = arith.constant 0 : i32
    %c0_i32_0 = arith.constant 0 : i32
    %c0_i32_1 = arith.constant 0 : i32
    return %c0_i32, %c0_i32_0 : i32, i32
  }
  func.func @transform_3(%arg0: i32) -> (i32, i32, i32) {
    %c0_i32 = arith.constant 0 : i32
    %c0_i32_0 = arith.constant 0 : i32
    %c0_i32_1 = arith.constant 0 : i32
    return %arg0, %c0_i32, %c0_i32_0 : i32, i32, i32
  }
}

</mosaic_0001>

<bundles_post_ra>
// kernel: tpu_custom_call.1
= control target key start
LH: loop header
LB: loop body
LE: loop exit
PB: predicated region body
PF: predicated region fallthrough
CT: control target
= control target key end

     0   :  { %8 = vsyncpa [#allocation3], 0  ;;  %s1119_s0 = inlined_call_operand.hbm [shape: f32[8,16], index: 0, kind: input, shape index: {}]   ;;  %s1120_s1 = inlined_call_operand.hbm [shape: f32[12,16,24], index: 1, kind: input, shape index: {}]   ;;  %s1121_s2 = inlined_call_operand.hbm [shape: f32[24,128], index: 2, kind: input, shape index: {}]   ;;  %s1122_s3 = inlined_call_operand.hbm [shape: f32[12,8,128], index: 3, kind: output, shape index: {}]  }
   0x1   :  { %9 = vsyncpa [#allocation6], 0 }
   0x2   :  { %11 = vsyncpa [#allocation6 + $0x1], 0 }
   0x3   :  { %12 = vsyncpa [#allocation4], 0 }
   0x4   :  { %14 = vsyncpa [#allocation4 + $0x1], 0  ;;  %s940_s12 = smov 0   ;;  %s942_s13 = smov 0  }
   0x5   :  { %s944_s14 = smov 0   ;;  %s946_s15 = smov 0  }
   0x6 LB: > { %s961_s16 = sadd.s32 4294967295, %s912_s15   ;;  %s630_s17 = sadd.s32 4294967294, %s912_s15   ;;  %s912_s15 = sphi %s946_s15, %s1136_s15   ;;  %s908_s14 = sphi %s944_s14, %s1135_s14   ;;  %s904_s13 = sphi %s942_s13, %s1134_s13   ;;  %s900_s12 = sphi %s940_s12, %s1133_s12  }
   0x7   : > { %p61_p0 = scmp.ne.s32.totalorder %s904_s13, %s900_s12  ;;  %p62_p1 = scmp.eq.s32.totalorder %s961_s16, 0 }
   0x8   : > { %p106_p2 = scmp.eq.s32.totalorder %s961_s16, 1  ;;  %p112_p3 = scmp.eq.s32.totalorder %s630_s17, 1 }
   0x9   : > { %p970_p4 = por %p62_p1, %p61_p0  ;;  %p631_p5 = scmp.ge.s32.totalorder %s912_s15, 1 }
   0xa   : > { %p975_p6 = por %p112_p3, %p61_p0  ;;  %p119_p7 = scmp.lt.s32.totalorder %s912_s15, 3 }
   0xb   : > { %s142_s22 = sshll.u32 %s1121_s2, 4  ;;  %s914_s24 = smov [#allocation7]   ;;  %s143_s22 = int_to_ptr.hbm [resolvable:$true] %s142_s22 }
   0xc   : > { %p983_p8 = pnand %p631_p5, %p119_p7  ;;  %s144_s25 = sshll.u32 %s914_s24, 4  ;;  %s145_s25 = int_to_ptr.vmem [resolvable:$true] %s144_s25 }
   0xd   : > { %s131_s28 = sshll.u32 %s1119_s0, 4  ;;  %s1123_s29 = smov 128   ;;  %s132_s28 = int_to_ptr.hbm [resolvable:$true] %s131_s28 }
   0xe   : > { %p689_p9 = pneg %p983_p8  ;;  %s1124_s30 = smov 8  }
   0xf   : > { %s917_s4 = smov [#allocation2]   ;;  %s999_s6 = sadd.s32 1, %s912_s15  }
  0x10   : > { %p690_p10 = pnand %p689_p9, %p62_p1  ;;  %s133_s5 = sshll.u32 %s917_s4, 4  ;;  %s134_s5 = int_to_ptr.vmem [resolvable:$true] %s133_s5 }
  0x11   : > { %s48_s7 = sadd.s32 1, %s908_s14  ;;  %s45_s8 = ssub.s32 %s912_s15, %s999_s6 }
  0x12   : > { %695 = dma.hbm_to_vmem [thread:$0]  (!%p690_p10), %s143_s22, 384, %s145_s25, [#allocation6], %s1123_s29, %s1123_s29, %s1124_s30  }
  0x13   : > { %692 = dma.hbm_to_vmem [thread:$0]  (!%p690_p10), %s132_s28, 128, %s134_s5, [#allocation3]  }
  0x14   : > { %p55_p12 = scmp.ne.s32.totalorder %s908_s14, %s904_s13  ;;  %p46_p13 = scmp.eq.s32.totalorder %s45_s8, 0 }
  0x15   : > { %p56_p0 = scmp.eq.s32.totalorder %s912_s15, 0  ;;  %p706_p5 = scmp.lt.s32.totalorder %s912_s15, 2 }
  0x16   : > { %p1009_p3 = por %p106_p2, %p55_p12  ;;  %s158_s11 = sand.u32 1, %s912_s15  }
  0x17   : > { %s1015_s10 = scalar_select %p46_p13, %s908_s14, %s48_s7  }
  0x18   : > { %p57_p7 = por %p56_p0, %p55_p12  ;;  %s160_s17 = sand.u32 1, %s908_s14  }
  0x19   : > { %s674_s20 = smul.u32 96, %s160_s17  ;;  %s159_s5 = scalar_lea.sflag [#allocation6], %s158_s11 }
  0x1a   : > { %p1019_p9 = pnand %p706_p5, %p57_p7  ;;  %s673_s22 = smul.u32 96, %s912_s15 }
  0x1b   : > { %s162_s27 = scalar_lea.vmem [#allocation5], %s674_s20  ;;  %s815_s30 = scalar_lea.hbm %s1120_s1, 192 }
  0x1c   : > { %s168_s26 = scalar_lea.hbm %s1120_s1, %s673_s22  ;;  %s171_s28 = sshll.u32 %s162_s27, 4  ;;  %s172_s28 = int_to_ptr.vmem [resolvable:$true] %s171_s28 }
  0x1d   : > { %s169_s4 = sshll.u32 %s168_s26, 4  ;;  %p812_p10 = pneg %p1019_p9  ;;  %s170_s4 = int_to_ptr.hbm [resolvable:$true] %s169_s4 }
  0x1e   : > { %s808_s7 = sshra.s32 %s170_s4, 4  ;;  %s809_s7 = int_to_ptr.hbm [resolvable:$true] %s808_s7 }
  0x1f   : > { %s810_s8 = scalar_lea.hbm %s809_s7, 96  ;;  %p816_p0 = scmp.lt.s32.totalorder %s809_s7, %s1120_s1 }
  0x20   : > { %p811_p2 = scmp.ne.s32.totalorder %s809_s7, %s810_s8  ;;  %p817_p5 = scmp.lt.s32.totalorder %s815_s30, %s810_s8 }
  0x22   : > { %p813_p12 = pnand %p812_p10, %p811_p2  ;;  %p818_p7 = por %p817_p5, %p816_p0 }
  0x24   : > { %p814_p13 = pneg %p813_p12 }
  0x26   : > { %p819_p11 = pnand %p818_p7, %p814_p13 }
  0x28   : > { %822 = shalt.err (!%p819_p11)
}
  0x29   : > { %s1130_s11 = smov 8   ;;  %s1131_s20 = smov 128  }
  0x2a   : > { %699 = dma.hbm_to_vmem [thread:$0]  (!%p1019_p9), %s170_s4, 1536, %s172_s28, %s159_s5, %s1131_s20, %s1131_s20, %s1130_s11  }
  0x2b   : > { %183 = sbr.rel (%p983_p8) target bundleno = 465 (0x1d1), region = 32 }
  0x30   : > { %883 = dma.done.wait (%p62_p1), [#allocation3], 128  }
  0x31   : > { %885 = vsyncadd (%p62_p1), [#allocation3], 4294967168  ;;  %s190_s29 = sand.u32 1, %s961_s16   ;;  %s1048_s30 = sand.u32 1, %s904_s13  }
  0x32   : > { %s675_s21 = smul.u32 96, %s1048_s30  ;;  %s191_s25 = scalar_lea.sflag [#allocation6], %s190_s29 }
  0x34   : > { %s1051_s26 = scalar_lea.vmem [#allocation5], %s675_s21 }
  0x35   : > { %887 = dma.done.wait (%p970_p4), %s191_s25, 1536  }
  0x36   : > { %889 = vsyncadd (%p970_p4), %s191_s25, 4294965760 }
  0x37   : > { %891 = dma.done.wait (%p62_p1), [#allocation6], 384  }
  0x38   : > { %893 = vsyncadd (%p62_p1), [#allocation6], 4294966912  ;;  %v230_v0 = vld [vmem:[%s1051_s26 + $0x8] sm:$0xff]  ;;  %v229_v1 = vld [vmem:[%s1051_s26] sm:$0xff]  ;;  %vm231_vm0 = vcmask 130048   ;;  %vm255_vm1 = vcmask 195584  }
  0x39   : > { %v225_v2 = vld [vmem:[#allocation2] sm:$0xff]  ;;  %249 = vmatpush.msra.mxu0 %v230_v0  ;;  %v642_v4 = vld [vmem:[%s1051_s26 + $0x10] sm:$0xff]  ;;  %v227_v6 = vld [vmem:[#allocation7 + $0x8] sm:$0xff]  ;;  %s676_s18 = smul.u32 48, %s1048_s30  ;;  %s521_s17 = scalar_lea.sflag [#allocation4], %s1048_s30 }
  0x3a   : > { %v643_v3 = vld [vmem:[%s1051_s26 + $0x18] sm:$0xff]  ;;  %v228_v5 = vld [vmem:[#allocation7 + $0x10] sm:$0xff]  ;;  %v226_v7 = vld [vmem:[#allocation7] sm:$0xff]  ;;  %s672_s27 = smul.u32 48, %s961_s16  ;;  %s858_s20 = scalar_lea.hbm %s1122_s3, 96 }
  0x3b   : > { %297 = vmatpush.msra.mxu2 %v643_v3  ;;  %272 = vmatpush.msra.mxu1 %v228_v5  ;;  %v648_v8 = vld [vmem:[%s1051_s26 + $0x28] sm:$0xff]  ;;  %v653_v9 = vld [vmem:[%s1051_s26 + $0x38] sm:$0xff]  ;;  %v647_v10 = vld [vmem:[%s1051_s26 + $0x20] sm:$0xff]  ;;  %s222_s23 = scalar_lea.vmem [#allocation8], %s676_s18 }
  0x3c   : > { %250 = vmatpush.msra.mxu0 %v229_v1  ;;  %319 = vmatpush.msra.mxu3 %v228_v5  ;;  %v652_v11 = vld [vmem:[%s1051_s26 + $0x30] sm:$0xff]  ;;  %v658_v12 = vld [vmem:[%s1051_s26 + $0x48] sm:$0xff]  ;;  %v657_v13 = vld [vmem:[%s1051_s26 + $0x40] sm:$0xff]  ;;  %s532_s5 = scalar_lea.hbm %s1122_s3, %s672_s27  ;;  %s533_s7 = sshll.u32 %s222_s23, 4  ;;  %s534_s7 = int_to_ptr.vmem [resolvable:$true] %s533_s7 }
  0x3d   : > { %640 = vmatmul.msk.f32.vlgmr.msra.gmra.mxu0 %vm231_vm0, %v225_v2  ;;  %298 = vmatpush.msra.mxu2 %v642_v4  ;;  %v663_v14 = vld [vmem:[%s1051_s26 + $0x58] sm:$0xff]  ;;  %v662_v16 = vld [vmem:[%s1051_s26 + $0x50] sm:$0xff]  ;;  %s535_s8 = sshll.u32 %s532_s5, 4  ;;  %s536_s8 = int_to_ptr.hbm [resolvable:$true] %s535_s8 }
  0x3e   : > { %644 = vmatmul.msk.f32.vlgmr.msra.gmra.mxu2 %vm231_vm0, %v225_v2  ;;  %273 = vmatpush.msra.mxu1 %v227_v6  ;;  %s852_s24 = sshra.s32 %s536_s8, 4  ;;  %s853_s24 = int_to_ptr.hbm [resolvable:$true] %s852_s24 }
  0x3f   : > { %320 = vmatpush.msra.mxu3 %v227_v6  ;;  %367 = vmatpush.msrb.mxu2 %v228_v5  ;;  %s854_s22 = scalar_lea.hbm %s853_s24, 48  ;;  %p859_p11 = scmp.lt.s32.totalorder %s853_s24, %s1122_s3 }
  0x40   : > { %274 = vmatpush.msra.mxu1 %v226_v7  ;;  %345 = vmatpush.msrb.mxu0 %v648_v8  ;;  %p855_p1 = scmp.ne.s32.totalorder %s853_s24, %s854_s22  ;;  %p860_p9 = scmp.lt.s32.totalorder %s858_s20, %s854_s22 }
  0x41   : > { %368 = vmatpush.msrb.mxu2 %v227_v6  ;;  %321 = vmatpush.msra.mxu3 %v226_v7 }
  0x42   : > { %393 = vmatpush.msrb.mxu1 %v653_v9  ;;  %346 = vmatpush.msrb.mxu0 %v647_v10  ;;  %p856_p4 = pnand %p855_p1, %p1009_p3  ;;  %p861_p2 = por %p860_p9, %p859_p11 }
  0x43   : > { %415 = vmatpush.msrb.mxu3 %v228_v5  ;;  %369 = vmatpush.msrb.mxu2 %v226_v7 }
  0x44   : > { %394 = vmatpush.msrb.mxu1 %v652_v11  ;;  %441 = vmatpush.msra.mxu0 %v658_v12  ;;  %p857_p8 = pneg %p856_p4 }
  0x45   : > { %416 = vmatpush.msrb.mxu3 %v227_v6  ;;  %463 = vmatpush.msra.mxu2 %v228_v5 }
  0x46   : > { %649 = vmatmul.msk.f32.vlgmr.msrb.gmra.mxu0 %vm231_vm0, %v225_v2  ;;  %p862_p10 = pnand %p861_p2, %p857_p8 }
  0x47   : > { %417 = vmatpush.msrb.mxu3 %v226_v7  ;;  %464 = vmatpush.msra.mxu2 %v227_v6 }
  0x48   : > { %442 = vmatpush.msra.mxu0 %v657_v13 }
  0x49   : > { %465 = vmatpush.msra.mxu2 %v226_v7 }
  0x4e   : > { %659 = vmatmul.msk.f32.vlgmr.msra.gmra.mxu0 %vm231_vm0, %v225_v2 }
  0xba   : > { %v252_v15 = vpop.f32.mrf.mxu0 }
  0xbb   : > { %641 = vmatmul.msk.f32.vlgmr.msra.gmra.mxu1 %vm255_vm1, %v252_v15 }
  0xbc   : > { %489 = vmatpush.msra.mxu1 %v663_v14 }
  0xbe   : > { %490 = vmatpush.msra.mxu1 %v662_v16 }
  0xc1   : > { %v300_v17 = vpop.f32.mrf.mxu2 }
  0xc2   : > { %645 = vmatmul.msk.f32.vlgmr.msra.gmra.mxu3 %vm255_vm1, %v300_v17 }
  0xc3   : > { %654 = vmatmul.msk.f32.vlgmr.msrb.gmra.mxu1 %vm231_vm0, %v225_v2  ;;  %511 = vmatpush.msra.mxu3 %v228_v5  ;;  %v348_v18 = vpop.f32.mrf.mxu0 }
  0xc4   : > { %650 = vmatmul.msk.f32.vlgmr.msrb.gmra.mxu2 %vm255_vm1, %v348_v18 }
  0xc5   : > { %512 = vmatpush.msra.mxu3 %v227_v6 }
  0xc7   : > { %513 = vmatpush.msra.mxu3 %v226_v7 }
  0xcb   : > { %664 = vmatmul.msk.f32.vlgmr.msra.gmra.mxu1 %vm231_vm0, %v225_v2  ;;  %v444_v19 = vpop.f32.mrf.mxu0 }
  0xcc   : > { %660 = vmatmul.msk.f32.vlgmr.msra.gmra.mxu2 %vm255_vm1, %v444_v19 }
 0x138   : > { %v276_v20 = vpop.f32.mrf.mxu1 }
 0x139   : > { %279 = vst [vmem:[%s222_s23] sm:$0xff] %v276_v20 }
 0x140   : > { %v396_v21 = vpop.f32.mrf.mxu1 }
 0x141   : > { %655 = vmatmul.msk.f32.vlgmr.msrb.gmra.mxu3 %vm255_vm1, %v396_v21 }
 0x145   : > { %v323_v23 = vpop.f32.mrf.mxu3 }
 0x146   : > { %646 = vst [vmem:[%s222_s23 + $0x8] sm:$0xff] %v323_v23 }
 0x147   : > { %v371_v24 = vpop.f32.mrf.mxu2 }
 0x148   : > { %v492_v22 = vpop.f32.mrf.mxu1  ;;  %651 = vst [vmem:[%s222_s23 + $0x10] sm:$0xff] %v371_v24 }
 0x149   : > { %665 = vmatmul.msk.f32.vlgmr.msra.gmra.mxu3 %vm255_vm1, %v492_v22 }
 0x14f   : > { %v467_v25 = vpop.f32.mrf.mxu2 }
 0x150   : > { %661 = vst [vmem:[%s222_s23 + $0x20] sm:$0xff] %v467_v25 }
 0x1c4   : > { %v419_v26 = vpop.f32.mrf.mxu3 }
 0x1c5   : > { %656 = vst [vmem:[%s222_s23 + $0x18] sm:$0xff] %v419_v26 }
 0x1cc   : > { %v515_v27 = vpop.f32.mrf.mxu3 }
 0x1cd   : > { %666 = vst [vmem:[%s222_s23 + $0x28] sm:$0xff] %v515_v27 }
 0x1ce   : > { %865 = shalt.err (!%p862_p10)
}
 0x1cf   : > { %s918_s30 = smov 128   ;;  %s919_s25 = smov 8  }
 0x1d0   : > { %687 = dma.vmem_to_hbm [thread:$0]  (%p1009_p3), %s534_s7, 768, %s536_s8, %s521_s17, %s918_s30, %s918_s30, %s919_s25  }
 0x1d1 PF: > { %s550_s26 = sand.u32 1, %s900_s12   ;;  %p1132_p12 = scmp.ge.s32.totalorder %s912_s15, 2 }
 0x1d2   : > { %s551_s18 = scalar_lea.sflag [#allocation4], %s550_s26 }
 0x1d3   : > { %p701_p13 = pnand %p1132_p12, %p975_p6 }
 0x1d5   : > { %p702_p0 = pneg %p701_p13 }
 0x1d7   : > { %895 = dma.done.wait (%p702_p0), %s551_s18, 768  }
 0x1d8   : > { %897 = vsyncadd (%p702_p0), %s551_s18, 4294966528  ;;  %p17_p5 = scmp.ge.s32.totalorder %s999_s6, 4   ;;  %s1133_s12 = smov %s904_s13 }
 0x1d9   : > { %s1134_s13 = smov %s908_s14  ;;  %s1135_s14 = smov %s1015_s10 }
 0x1da   : > { %s1136_s15 = smov %s999_s6  ;;  %19 = sbr.rel (!%p17_p5) target bundleno = 6 (0x6), region = 96 }
 0x1df   :  { %557 = vsyncpa [#allocation3], 1 }
 0x1e0   :  { %559 = vsyncpa [#allocation3 + $0x1], 1 }
 0x1e1   :  { %560 = vsyncpa [#allocation6], 1 }
 0x1e2   :  { %562 = vsyncpa [#allocation6 + $0x1], 1 }
 0x1e3   :  { %563 = vsyncpa [#allocation4], 1 }
 0x1e4   :  { %565 = vsyncpa [#allocation4 + $0x1], 1 }

// kernel: tpu_custom_call.1
= control target key start
LH: loop header
LB: loop body
LE: loop exit
PB: predicated region body
PF: predicated region fallthrough
CT: control target
= control target key end

     0   :  { %8 = vsyncpa [#allocation3], 0  ;;  %s1119_s0 = inlined_call_operand.hbm [shape: f32[8,16], index: 0, kind: input, shape index: {}]   ;;  %s1120_s1 = inlined_call_operand.hbm [shape: f32[12,16,24], index: 1, kind: input, shape index: {}]   ;;  %s1121_s2 = inlined_call_operand.hbm [shape: f32[24,128], index: 2, kind: input, shape index: {}]   ;;  %s1122_s3 = inlined_call_operand.hbm [shape: f32[12,8,128], index: 3, kind: output, shape index: {}]  }
   0x1   :  { %9 = vsyncpa [#allocation6], 0 }
   0x2   :  { %11 = vsyncpa [#allocation6 + $0x1], 0 }
   0x3   :  { %12 = vsyncpa [#allocation4], 0 }
   0x4   :  { %14 = vsyncpa [#allocation4 + $0x1], 0  ;;  %s940_s12 = smov 0   ;;  %s942_s13 = smov 0  }
   0x5   :  { %s944_s14 = smov 0   ;;  %s946_s15 = smov 0  }
   0x6 LB: > { %s961_s16 = sadd.s32 4294967295, %s912_s15   ;;  %s630_s17 = sadd.s32 4294967294, %s912_s15   ;;  %s912_s15 = sphi %s946_s15, %s1136_s15   ;;  %s908_s14 = sphi %s944_s14, %s1135_s14   ;;  %s904_s13 = sphi %s942_s13, %s1134_s13   ;;  %s900_s12 = sphi %s940_s12, %s1133_s12  }
   0x7   : > { %p61_p0 = scmp.ne.s32.totalorder %s904_s13, %s900_s12  ;;  %p62_p1 = scmp.eq.s32.totalorder %s961_s16, 0 }
   0x8   : > { %p106_p2 = scmp.eq.s32.totalorder %s961_s16, 1  ;;  %p112_p3 = scmp.eq.s32.totalorder %s630_s17, 1 }
   0x9   : > { %p970_p4 = por %p62_p1, %p61_p0  ;;  %p631_p5 = scmp.ge.s32.totalorder %s912_s15, 1 }
   0xa   : > { %p975_p6 = por %p112_p3, %p61_p0  ;;  %p119_p7 = scmp.lt.s32.totalorder %s912_s15, 3 }
   0xb   : > { %s142_s22 = sshll.u32 %s1121_s2, 4  ;;  %s914_s24 = smov [#allocation7]   ;;  %s143_s22 = int_to_ptr.hbm [resolvable:$true] %s142_s22 }
   0xc   : > { %p983_p8 = pnand %p631_p5, %p119_p7  ;;  %s144_s25 = sshll.u32 %s914_s24, 4  ;;  %s145_s25 = int_to_ptr.vmem [resolvable:$true] %s144_s25 }
   0xd   : > { %s131_s28 = sshll.u32 %s1119_s0, 4  ;;  %s1123_s29 = smov 128   ;;  %s132_s28 = int_to_ptr.hbm [resolvable:$true] %s131_s28 }
   0xe   : > { %p689_p9 = pneg %p983_p8  ;;  %s1124_s30 = smov 8  }
   0xf   : > { %s917_s4 = smov [#allocation2]   ;;  %s999_s6 = sadd.s32 1, %s912_s15  }
  0x10   : > { %p690_p10 = pnand %p689_p9, %p62_p1  ;;  %s133_s5 = sshll.u32 %s917_s4, 4  ;;  %s134_s5 = int_to_ptr.vmem [resolvable:$true] %s133_s5 }
  0x11   : > { %s48_s7 = sadd.s32 1, %s908_s14  ;;  %s45_s8 = ssub.s32 %s912_s15, %s999_s6 }
  0x12   : > { %695 = dma.hbm_to_vmem [thread:$0]  (!%p690_p10), %s143_s22, 384, %s145_s25, [#allocation6], %s1123_s29, %s1123_s29, %s1124_s30  }
  0x13   : > { %692 = dma.hbm_to_vmem [thread:$0]  (!%p690_p10), %s132_s28, 128, %s134_s5, [#allocation3]  }
  0x14   : > { %p55_p12 = scmp.ne.s32.totalorder %s908_s14, %s904_s13  ;;  %p46_p13 = scmp.eq.s32.totalorder %s45_s8, 0 }
  0x15   : > { %p56_p0 = scmp.eq.s32.totalorder %s912_s15, 0  ;;  %p706_p5 = scmp.lt.s32.totalorder %s912_s15, 2 }
  0x16   : > { %p1009_p3 = por %p106_p2, %p55_p12  ;;  %s158_s11 = sand.u32 1, %s912_s15  }
  0x17   : > { %s1015_s10 = scalar_select %p46_p13, %s908_s14, %s48_s7  }
  0x18   : > { %p57_p7 = por %p56_p0, %p55_p12  ;;  %s160_s17 = sand.u32 1, %s908_s14  }
  0x19   : > { %s674_s20 = smul.u32 96, %s160_s17  ;;  %s159_s5 = scalar_lea.sflag [#allocation6], %s158_s11 }
  0x1a   : > { %p1019_p9 = pnand %p706_p5, %p57_p7  ;;  %s673_s22 = smul.u32 96, %s912_s15 }
  0x1b   : > { %s162_s27 = scalar_lea.vmem [#allocation5], %s674_s20  ;;  %s815_s30 = scalar_lea.hbm %s1120_s1, 192 }
  0x1c   : > { %s168_s26 = scalar_lea.hbm %s1120_s1, %s673_s22  ;;  %s171_s28 = sshll.u32 %s162_s27, 4  ;;  %s172_s28 = int_to_ptr.vmem [resolvable:$true] %s171_s28 }
  0x1d   : > { %s169_s4 = sshll.u32 %s168_s26, 4  ;;  %p812_p10 = pneg %p1019_p9  ;;  %s170_s4 = int_to_ptr.hbm [resolvable:$true] %s169_s4 }
  0x1e   : > { %s808_s7 = sshra.s32 %s170_s4, 4  ;;  %s809_s7 = int_to_ptr.hbm [resolvable:$true] %s808_s7 }
  0x1f   : > { %s810_s8 = scalar_lea.hbm %s809_s7, 96  ;;  %p816_p0 = scmp.lt.s32.totalorder %s809_s7, %s1120_s1 }
  0x20   : > { %p811_p2 = scmp.ne.s32.totalorder %s809_s7, %s810_s8  ;;  %p817_p5 = scmp.lt.s32.totalorder %s815_s30, %s810_s8 }
  0x22   : > { %p813_p12 = pnand %p812_p10, %p811_p2  ;;  %p818_p7 = por %p817_p5, %p816_p0 }
  0x24   : > { %p814_p13 = pneg %p813_p12 }
  0x26   : > { %p819_p11 = pnand %p818_p7, %p814_p13 }
  0x28   : > { %822 = shalt.err (!%p819_p11)
}
  0x29   : > { %s1130_s11 = smov 8   ;;  %s1131_s20 = smov 128  }
  0x2a   : > { %699 = dma.hbm_to_vmem [thread:$0]  (!%p1019_p9), %s170_s4, 1536, %s172_s28, %s159_s5, %s1131_s20, %s1131_s20, %s1130_s11  }
  0x2b   : > { %183 = sbr.rel (%p983_p8) target bundleno = 465 (0x1d1), region = 32 }
  0x30   : > { %883 = dma.done.wait (%p62_p1), [#allocation3], 128  }
  0x31   : > { %885 = vsyncadd (%p62_p1), [#allocation3], 4294967168  ;;  %s190_s29 = sand.u32 1, %s961_s16   ;;  %s1048_s30 = sand.u32 1, %s904_s13  }
  0x32   : > { %s675_s21 = smul.u32 96, %s1048_s30  ;;  %s191_s25 = scalar_lea.sflag [#allocation6], %s190_s29 }
  0x34   : > { %s1051_s26 = scalar_lea.vmem [#allocation5], %s675_s21 }
  0x35   : > { %887 = dma.done.wait (%p970_p4), %s191_s25, 1536  }
  0x36   : > { %889 = vsyncadd (%p970_p4), %s191_s25, 4294965760 }
  0x37   : > { %891 = dma.done.wait (%p62_p1), [#allocation6], 384  }
  0x38   : > { %893 = vsyncadd (%p62_p1), [#allocation6], 4294966912  ;;  %v230_v0 = vld [vmem:[%s1051_s26 + $0x8] sm:$0xff]  ;;  %v229_v1 = vld [vmem:[%s1051_s26] sm:$0xff]  ;;  %vm231_vm0 = vcmask 130048   ;;  %vm255_vm1 = vcmask 195584  }
  0x39   : > { %v225_v2 = vld [vmem:[#allocation2] sm:$0xff]  ;;  %249 = vmatpush.msra.mxu0 %v230_v0  ;;  %v642_v4 = vld [vmem:[%s1051_s26 + $0x10] sm:$0xff]  ;;  %v227_v6 = vld [vmem:[#allocation7 + $0x8] sm:$0xff]  ;;  %s676_s18 = smul.u32 48, %s1048_s30  ;;  %s521_s17 = scalar_lea.sflag [#allocation4], %s1048_s30 }
  0x3a   : > { %v643_v3 = vld [vmem:[%s1051_s26 + $0x18] sm:$0xff]  ;;  %v228_v5 = vld [vmem:[#allocation7 + $0x10] sm:$0xff]  ;;  %v226_v7 = vld [vmem:[#allocation7] sm:$0xff]  ;;  %s672_s27 = smul.u32 48, %s961_s16  ;;  %s858_s20 = scalar_lea.hbm %s1122_s3, 96 }
  0x3b   : > { %297 = vmatpush.msra.mxu2 %v643_v3  ;;  %272 = vmatpush.msra.mxu1 %v228_v5  ;;  %v648_v8 = vld [vmem:[%s1051_s26 + $0x28] sm:$0xff]  ;;  %v653_v9 = vld [vmem:[%s1051_s26 + $0x38] sm:$0xff]  ;;  %v647_v10 = vld [vmem:[%s1051_s26 + $0x20] sm:$0xff]  ;;  %s222_s23 = scalar_lea.vmem [#allocation8], %s676_s18 }
  0x3c   : > { %250 = vmatpush.msra.mxu0 %v229_v1  ;;  %319 = vmatpush.msra.mxu3 %v228_v5  ;;  %v652_v11 = vld [vmem:[%s1051_s26 + $0x30] sm:$0xff]  ;;  %v658_v12 = vld [vmem:[%s1051_s26 + $0x48] sm:$0xff]  ;;  %v657_v13 = vld [vmem:[%s1051_s26 + $0x40] sm:$0xff]  ;;  %s532_s5 = scalar_lea.hbm %s1122_s3, %s672_s27  ;;  %s533_s7 = sshll.u32 %s222_s23, 4  ;;  %s534_s7 = int_to_ptr.vmem [resolvable:$true] %s533_s7 }
  0x3d   : > { %640 = vmatmul.msk.f32.vlgmr.msra.gmra.mxu0 %vm231_vm0, %v225_v2  ;;  %298 = vmatpush.msra.mxu2 %v642_v4  ;;  %v663_v14 = vld [vmem:[%s1051_s26 + $0x58] sm:$0xff]  ;;  %v662_v16 = vld [vmem:[%s1051_s26 + $0x50] sm:$0xff]  ;;  %s535_s8 = sshll.u32 %s532_s5, 4  ;;  %s536_s8 = int_to_ptr.hbm [resolvable:$true] %s535_s8 }
  0x3e   : > { %644 = vmatmul.msk.f32.vlgmr.msra.gmra.mxu2 %vm231_vm0, %v225_v2  ;;  %273 = vmatpush.msra.mxu1 %v227_v6  ;;  %s852_s24 = sshra.s32 %s536_s8, 4  ;;  %s853_s24 = int_to_ptr.hbm [resolvable:$true] %s852_s24 }
  0x3f   : > { %320 = vmatpush.msra.mxu3 %v227_v6  ;;  %367 = vmatpush.msrb.mxu2 %v228_v5  ;;  %s854_s22 = scalar_lea.hbm %s853_s24, 48  ;;  %p859_p11 = scmp.lt.s32.totalorder %s853_s24, %s1122_s3 }
  0x40   : > { %274 = vmatpush.msra.mxu1 %v226_v7  ;;  %345 = vmatpush.msrb.mxu0 %v648_v8  ;;  %p855_p1 = scmp.ne.s32.totalorder %s853_s24, %s854_s22  ;;  %p860_p9 = scmp.lt.s32.totalorder %s858_s20, %s854_s22 }
  0x41   : > { %368 = vmatpush.msrb.mxu2 %v227_v6  ;;  %321 = vmatpush.msra.mxu3 %v226_v7 }
  0x42   : > { %393 = vmatpush.msrb.mxu1 %v653_v9  ;;  %346 = vmatpush.msrb.mxu0 %v647_v10  ;;  %p856_p4 = pnand %p855_p1, %p1009_p3  ;;  %p861_p2 = por %p860_p9, %p859_p11 }
  0x43   : > { %415 = vmatpush.msrb.mxu3 %v228_v5  ;;  %369 = vmatpush.msrb.mxu2 %v226_v7 }
  0x44   : > { %394 = vmatpush.msrb.mxu1 %v652_v11  ;;  %441 = vmatpush.msra.mxu0 %v658_v12  ;;  %p857_p8 = pneg %p856_p4 }
  0x45   : > { %416 = vmatpush.msrb.mxu3 %v227_v6  ;;  %463 = vmatpush.msra.mxu2 %v228_v5 }
  0x46   : > { %649 = vmatmul.msk.f32.vlgmr.msrb.gmra.mxu0 %vm231_vm0, %v225_v2  ;;  %p862_p10 = pnand %p861_p2, %p857_p8 }
  0x47   : > { %417 = vmatpush.msrb.mxu3 %v226_v7  ;;  %464 = vmatpush.msra.mxu2 %v227_v6 }
  0x48   : > { %442 = vmatpush.msra.mxu0 %v657_v13 }
  0x49   : > { %465 = vmatpush.msra.mxu2 %v226_v7 }
  0x4e   : > { %659 = vmatmul.msk.f32.vlgmr.msra.gmra.mxu0 %vm231_vm0, %v225_v2 }
  0xba   : > { %v252_v15 = vpop.f32.mrf.mxu0 }
  0xbb   : > { %641 = vmatmul.msk.f32.vlgmr.msra.gmra.mxu1 %vm255_vm1, %v252_v15 }
  0xbc   : > { %489 = vmatpush.msra.mxu1 %v663_v14 }
  0xbe   : > { %490 = vmatpush.msra.mxu1 %v662_v16 }
  0xc1   : > { %v300_v17 = vpop.f32.mrf.mxu2 }
  0xc2   : > { %645 = vmatmul.msk.f32.vlgmr.msra.gmra.mxu3 %vm255_vm1, %v300_v17 }
  0xc3   : > { %654 = vmatmul.msk.f32.vlgmr.msrb.gmra.mxu1 %vm231_vm0, %v225_v2  ;;  %511 = vmatpush.msra.mxu3 %v228_v5  ;;  %v348_v18 = vpop.f32.mrf.mxu0 }
  0xc4   : > { %650 = vmatmul.msk.f32.vlgmr.msrb.gmra.mxu2 %vm255_vm1, %v348_v18 }
  0xc5   : > { %512 = vmatpush.msra.mxu3 %v227_v6 }
  0xc7   : > { %513 = vmatpush.msra.mxu3 %v226_v7 }
  0xcb   : > { %664 = vmatmul.msk.f32.vlgmr.msra.gmra.mxu1 %vm231_vm0, %v225_v2  ;;  %v444_v19 = vpop.f32.mrf.mxu0 }
  0xcc   : > { %660 = vmatmul.msk.f32.vlgmr.msra.gmra.mxu2 %vm255_vm1, %v444_v19 }
 0x138   : > { %v276_v20 = vpop.f32.mrf.mxu1 }
 0x139   : > { %279 = vst [vmem:[%s222_s23] sm:$0xff] %v276_v20 }
 0x140   : > { %v396_v21 = vpop.f32.mrf.mxu1 }
 0x141   : > { %655 = vmatmul.msk.f32.vlgmr.msrb.gmra.mxu3 %vm255_vm1, %v396_v21 }
 0x145   : > { %v323_v23 = vpop.f32.mrf.mxu3 }
 0x146   : > { %646 = vst [vmem:[%s222_s23 + $0x8] sm:$0xff] %v323_v23 }
 0x147   : > { %v371_v24 = vpop.f32.mrf.mxu2 }
 0x148   : > { %v492_v22 = vpop.f32.mrf.mxu1  ;;  %651 = vst [vmem:[%s222_s23 + $0x10] sm:$0xff] %v371_v24 }
 0x149   : > { %665 = vmatmul.msk.f32.vlgmr.msra.gmra.mxu3 %vm255_vm1, %v492_v22 }
 0x14f   : > { %v467_v25 = vpop.f32.mrf.mxu2 }
 0x150   : > { %661 = vst [vmem:[%s222_s23 + $0x20] sm:$0xff] %v467_v25 }
 0x1c4   : > { %v419_v26 = vpop.f32.mrf.mxu3 }
 0x1c5   : > { %656 = vst [vmem:[%s222_s23 + $0x18] sm:$0xff] %v419_v26 }
 0x1cc   : > { %v515_v27 = vpop.f32.mrf.mxu3 }
 0x1cd   : > { %666 = vst [vmem:[%s222_s23 + $0x28] sm:$0xff] %v515_v27 }
 0x1ce   : > { %865 = shalt.err (!%p862_p10)
}
 0x1cf   : > { %s918_s30 = smov 128   ;;  %s919_s25 = smov 8  }
 0x1d0   : > { %687 = dma.vmem_to_hbm [thread:$0]  (%p1009_p3), %s534_s7, 768, %s536_s8, %s521_s17, %s918_s30, %s918_s30, %s919_s25  }
 0x1d1 PF: > { %s550_s26 = sand.u32 1, %s900_s12   ;;  %p1132_p12 = scmp.ge.s32.totalorder %s912_s15, 2 }
 0x1d2   : > { %s551_s18 = scalar_lea.sflag [#allocation4], %s550_s26 }
 0x1d3   : > { %p701_p13 = pnand %p1132_p12, %p975_p6 }
 0x1d5   : > { %p702_p0 = pneg %p701_p13 }
 0x1d7   : > { %895 = dma.done.wait (%p702_p0), %s551_s18, 768  }
 0x1d8   : > { %897 = vsyncadd (%p702_p0), %s551_s18, 4294966528  ;;  %p17_p5 = scmp.ge.s32.totalorder %s999_s6, 4   ;;  %s1133_s12 = smov %s904_s13 }
 0x1d9   : > { %s1134_s13 = smov %s908_s14  ;;  %s1135_s14 = smov %s1015_s10 }
 0x1da   : > { %s1136_s15 = smov %s999_s6  ;;  %19 = sbr.rel (!%p17_p5) target bundleno = 6 (0x6), region = 96 }
 0x1df   :  { %557 = vsyncpa [#allocation3], 1 }
 0x1e0   :  { %559 = vsyncpa [#allocation3 + $0x1], 1 }
 0x1e1   :  { %560 = vsyncpa [#allocation6], 1 }
 0x1e2   :  { %562 = vsyncpa [#allocation6 + $0x1], 1 }
 0x1e3   :  { %563 = vsyncpa [#allocation4], 1 }
 0x1e4   :  { %565 = vsyncpa [#allocation4 + $0x1], 1 }

</bundles_post_ra>
